<compile_context>
chip_gen: v7x
topology: tpu7x:2x2x1
jax: 0.10.0
libtpu: 0.0.40
codegen_flags: <defaults>
</compile_context>

<pallas_src>
import functools

import jax
import jax.numpy as jnp
from jax import lax
from jax.experimental import pallas as pl
from jax.experimental.pallas import tpu as pltpu

_SQRT_HALF = 0.7071067811865476
_TANH_C0 = 0.7978845608028654   # sqrt(2/pi)
_TANH_C1 = 0.044715

_VMEM_BUDGET = 40 * 1024 * 1024      # tile budget, fits v7x's 64 MiB physical
_VMEM_LIMIT_CAP = 48 * 1024 * 1024   # explicit scoped-VMEM limit (all gens)


def _gelu(h, approximate):
    """GELU on an f32 tile. Exact erf matches torch.nn.GELU() default;
    tanh approximation routes through the EUP (opt-in)."""
    if approximate:
        inner = jnp.float32(_TANH_C0) * (h + jnp.float32(_TANH_C1) * h * h * h)
        return 0.5 * h * (1.0 + jnp.tanh(inner))
    return 0.5 * h * (1.0 + lax.erf(h * jnp.float32(_SQRT_HALF)))


def _mlp_fused_kernel(x_ref, w1_ref, b1_ref, w2_ref, b2_ref, o_ref, *,
                      approximate_gelu):
    # x_ref: (TM, D), w1_ref: (H, D), b1_ref: (1, H), w2_ref: (D, H),
    # b2_ref: (1, D), o_ref: (TM, D).  Weights are resident (constant index
    # maps -> DMA'd once per call).
    h = lax.dot_general(
        x_ref[...], w1_ref[...],
        dimension_numbers=(((1,), (1,)), ((), ())),
        preferred_element_type=jnp.float32)
    h = _gelu(h + b1_ref[...].astype(jnp.float32), approximate_gelu)
    y = lax.dot_general(
        h.astype(w2_ref.dtype), w2_ref[...],
        dimension_numbers=(((1,), (1,)), ((), ())),
        preferred_element_type=jnp.float32)
    o_ref[...] = (y + b2_ref[...].astype(jnp.float32)).astype(o_ref.dtype)


def _mlp_tiled_kernel(x_ref, w1_ref, b1_ref, w2_ref, b2_ref, o_ref, acc_ref, *,
                      approximate_gelu):
    # x_ref: (TM, D), w1_ref: (TH, D), b1_ref: (1, TH), w2_ref: (D, TH),
    # b2_ref: (1, D), o_ref: (TM, D), acc_ref: (TM, D) f32 (resident over H).
    j = pl.program_id(1)

    h = lax.dot_general(
        x_ref[...], w1_ref[...],
        dimension_numbers=(((1,), (1,)), ((), ())),
        preferred_element_type=jnp.float32)
    h = _gelu(h + b1_ref[...].astype(jnp.float32), approximate_gelu)
    partial = lax.dot_general(
        h.astype(w2_ref.dtype), w2_ref[...],
        dimension_numbers=(((1,), (1,)), ((), ())),
        preferred_element_type=jnp.float32)

    # First H step writes (no zero-init store + read), later steps accumulate.
    @pl.when(j == 0)
    def _():
        acc_ref[...] = partial

    @pl.when(j > 0)
    def _():
        acc_ref[...] += partial

    @pl.when(j == pl.num_programs(1) - 1)
    def _():
        o_ref[...] = (acc_ref[...]
                      + b2_ref[...].astype(jnp.float32)).astype(o_ref.dtype)


def _round_up(x, m):
    return ((x + m - 1) // m) * m


def _sublane(dtype):
    return {4: 8, 2: 16, 1: 32}.get(jnp.dtype(dtype).itemsize, 8)


def _pick_hidden_tile(H, target, align=128):
    """Largest multiple of `align` <= target that divides H; else full H."""
    if H <= target or H % align != 0:
        return H
    th = (target // align) * align
    while th >= align:
        if H % th == 0:
            return th
        th -= align
    return H


def _pick_row_tile(M, block_rows, sub):
    """Large, sublane-aligned row tile; keep >=2 tiles for v7x megacore."""
    if M < sub:
        return M                                   # single full-extent block
    if M >= block_rows:
        tm = min(max(256, _round_up(block_rows, 256)), (M // sub) * sub)
    else:
        tm = (M // sub) * sub
    # v7x has 2 TensorCores; the 'parallel' M axis is what shards across them.
    if M > 2 * sub and pl.cdiv(M, tm) < 2:
        tm = _round_up(pl.cdiv(M, 2), sub)
    return tm


@functools.partial(
    jax.jit,
    static_argnames=("block_rows", "hidden_block", "approximate_gelu",
                     "compute_dtype", "force_tiled"))
def mlp_forward(x, w1, b1, w2, b2, *, block_rows=512, hidden_block=1536,
                approximate_gelu=False, compute_dtype=None, force_tiled=False):
    """x: (..., D); w1: (H, D); b1: (H,); w2: (D, H); b2: (D,)."""
    orig_dtype = x.dtype
    if compute_dtype is not None:
        # Feed the MXU at its bf16 rate; accumulation stays f32 and the
        # output is cast back to the module dtype.
        x = x.astype(compute_dtype)
        w1 = w1.astype(compute_dtype)
        w2 = w2.astype(compute_dtype)

    *lead, D = x.shape
    H = w1.shape[0]
    M = 1
    for s in lead:
        M *= s

    x2d = x.reshape(M, D)
    b1r = b1.reshape(1, H)
    b2r = b2.reshape(1, D)

    x_isz = jnp.dtype(x.dtype).itemsize
    w_isz = jnp.dtype(w1.dtype).itemsize
    sub = _sublane(x.dtype)
    tm = _pick_row_tile(M, block_rows, sub)
    n_m = pl.cdiv(M, tm)

    # Fused-variant VMEM estimate: both weights (double-buffered), x/out row
    # tiles (double-buffered), f32 GELU intermediate, biases.
    fused_bytes = (2 * 2 * H * D * w_isz
                   + 2 * 2 * tm * D * x_isz
                   + tm * H * 4
                   + 2 * (H + D) * 4)
    use_fused = (not force_tiled) and fused_bytes <= _VMEM_BUDGET

    if use_fused:
        kernel = functools.partial(_mlp_fused_kernel,
                                   approximate_gelu=approximate_gelu)
        grid_spec = pltpu.PrefetchScalarGridSpec(
            num_scalar_prefetch=0,
            grid=(n_m,),
            in_specs=[
                pl.BlockSpec((tm, D), lambda i: (i, 0)),   # x row tile
                pl.BlockSpec((H, D), lambda i: (0, 0)),    # fc1.weight (resident)
                pl.BlockSpec((1, H), lambda i: (0, 0)),    # fc1.bias   (resident)
                pl.BlockSpec((D, H), lambda i: (0, 0)),    # fc2.weight (resident)
                pl.BlockSpec((1, D), lambda i: (0, 0)),    # fc2.bias   (resident)
            ],
            out_specs=pl.BlockSpec((tm, D), lambda i: (i, 0)),
            scratch_shapes=[],
        )
        dim_sem = ("parallel",)
        est_bytes = fused_bytes
    else:
        th = _pick_hidden_tile(H, target=hidden_block)
        kernel = functools.partial(_mlp_tiled_kernel,
                                   approximate_gelu=approximate_gelu)
        grid_spec = pltpu.PrefetchScalarGridSpec(
            num_scalar_prefetch=0,
            grid=(n_m, H // th),
            in_specs=[
                pl.BlockSpec((tm, D), lambda i, j: (i, 0)),   # x row tile
                pl.BlockSpec((th, D), lambda i, j: (j, 0)),   # fc1.weight tile
                pl.BlockSpec((1, th), lambda i, j: (0, j)),   # fc1.bias tile
                pl.BlockSpec((D, th), lambda i, j: (0, j)),   # fc2.weight tile
                pl.BlockSpec((1, D), lambda i, j: (0, 0)),    # fc2.bias
            ],
            out_specs=pl.BlockSpec((tm, D), lambda i, j: (i, 0)),
            scratch_shapes=[pltpu.VMEM((tm, D), jnp.float32)],
        )
        dim_sem = ("parallel", "arbitrary")
        est_bytes = (2 * 2 * th * D * w_isz          # weight tiles
                     + 2 * 2 * tm * D * x_isz        # x / out tiles
                     + tm * D * 4 + tm * th * 4      # acc + GELU intermediate
                     + 2 * (th + D) * 4)

    # Explicit scoped-VMEM limit: above v5e's 16 MiB default when tiles are
    # large, but capped well under v7x's 64 MiB physical VMEM.
    vmem_limit = int(min(_VMEM_LIMIT_CAP,
                         max(32 * 1024 * 1024,
                             est_bytes * 5 // 4 + (2 << 20))))

    out2d = pl.pallas_call(
        kernel,
        out_shape=jax.ShapeDtypeStruct((M, D), orig_dtype),
        grid_spec=grid_spec,
        compiler_params=pltpu.CompilerParams(
            dimension_semantics=dim_sem,
            vmem_limit_bytes=vmem_limit),
    )(x2d, w1, b1r, w2, b2r)

    return out2d.reshape(*lead, D)


def _reference(x, w1, b1, w2, b2):
    h = jnp.einsum("bnd,hd->bnh", x, w1) + b1
    h = jax.nn.gelu(h, approximate=False)
    return jnp.einsum("bnh,dh->bnd", h, w2) + b2


if __name__ == "__main__":
    # Small ViT-like shapes: batch=2, seq=8, dim=32, hidden=64.
    B, N, D, Hdim = 2, 8, 32, 64

    key = jax.random.PRNGKey(0)
    kx, k1, k2, k3, k4 = jax.random.split(key, 5)

    x = jax.random.normal(kx, (B, N, D), dtype=jnp.float32)
    # Deterministic synthetic parameters (PyTorch layouts).
    w1 = jax.random.normal(k1, (Hdim, D), dtype=jnp.float32) * 0.02  # fc1.weight
    b1 = jax.random.normal(k2, (Hdim,), dtype=jnp.float32) * 0.02    # fc1.bias
    w2 = jax.random.normal(k3, (D, Hdim), dtype=jnp.float32) * 0.02  # fc2.weight
    b2 = jax.random.normal(k4, (D,), dtype=jnp.float32) * 0.02       # fc2.bias

    # 1) f32, fused (weights resident), exact erf GELU.
    out = jax.block_until_ready(mlp_forward(x, w1, b1, w2, b2))
    ref = _reference(x, w1, b1, w2, b2)
    assert out.shape == (B, N, D)
    assert jnp.allclose(out, ref, atol=1e-5, rtol=1e-5), "fused mismatch"

    # 2) Ragged token count (M not a multiple of the row tile) exercises the
    #    masked final row block (no pad/slice copies).
    N2 = 5
    x2 = jax.random.normal(kx, (B, N2, D), dtype=jnp.float32)
    out2 = jax.block_until_ready(mlp_forward(x2, w1, b1, w2, b2))
    ref2 = _reference(x2, w1, b1, w2, b2)
    assert out2.shape == (B, N2, D)
    assert jnp.allclose(out2, ref2, atol=1e-5, rtol=1e-5), "ragged mismatch"

    # 3) Tiled-H accumulator path with multiple hidden tiles (forced).
    D3, H3 = 128, 256
    k5, k6, k7, k8, k9 = jax.random.split(jax.random.PRNGKey(1), 5)
    x3 = jax.random.normal(k5, (B, N, D3), dtype=jnp.float32)
    w1_3 = jax.random.normal(k6, (H3, D3), dtype=jnp.float32) * 0.02
    b1_3 = jax.random.normal(k7, (H3,), dtype=jnp.float32) * 0.02
    w2_3 = jax.random.normal(k8, (D3, H3), dtype=jnp.float32) * 0.02
    b2_3 = jax.random.normal(k9, (D3,), dtype=jnp.float32) * 0.02
    out3 = jax.block_until_ready(
        mlp_forward(x3, w1_3, b1_3, w2_3, b2_3,
                    hidden_block=128, force_tiled=True))
    ref3 = _reference(x3, w1_3, b1_3, w2_3, b2_3)
    assert jnp.allclose(out3, ref3, atol=1e-5, rtol=1e-5), "tiled-H mismatch"

    # 4) bf16 MXU feed (mixed precision), looser tolerance.
    out_bf = jax.block_until_ready(
        mlp_forward(x, w1, b1, w2, b2, compute_dtype=jnp.bfloat16))
    assert out_bf.shape == (B, N, D)
    assert jnp.allclose(out_bf, ref, atol=2e-2, rtol=2e-2), "bf16 mismatch"

    print("KERNEL_OK")
</pallas_src>

<mosaic_0001>
module attributes {stable_mosaic.version = 11 : i64} {
  func.func @_mlp_fused_kernel(%arg0: i32, %arg1: memref<16x32xf32, #tpu.memory_space<vmem>>, %arg2: memref<64x32xf32, #tpu.memory_space<vmem>>, %arg3: memref<1x64xf32, #tpu.memory_space<vmem>>, %arg4: memref<32x64xf32, #tpu.memory_space<vmem>>, %arg5: memref<1x32xf32, #tpu.memory_space<vmem>>, %arg6: memref<16x32xf32, #tpu.memory_space<vmem>>) attributes {dimension_semantics = [#tpu.dimension_semantics<parallel>], iteration_bounds = array<i64: 1>, scalar_prefetch = 0 : i64, scratch_operands = 0 : i64, tpu.core_type = #tpu.core_type<tc>, window_params = [{transform_indices = @transform_0, window_bounds = array<i64: 16, 32>}, {pipeline_mode = #tpu.pipeline_mode<synchronous>, transform_indices = @transform_1, window_bounds = array<i64: 64, 32>}, {pipeline_mode = #tpu.pipeline_mode<synchronous>, transform_indices = @transform_2, window_bounds = array<i64: 1, 64>}, {pipeline_mode = #tpu.pipeline_mode<synchronous>, transform_indices = @transform_3, window_bounds = array<i64: 32, 64>}, {pipeline_mode = #tpu.pipeline_mode<synchronous>, transform_indices = @transform_4, window_bounds = array<i64: 1, 32>}, {transform_indices = @transform_5, window_bounds = array<i64: 16, 32>}]} {
    %c0 = arith.constant 0 : index
    %c0_0 = arith.constant 0 : index
    %0 = vector.load %arg1[%c0, %c0_0] : memref<16x32xf32, #tpu.memory_space<vmem>>, vector<16x32xf32>
    %c0_1 = arith.constant 0 : index
    %c0_2 = arith.constant 0 : index
    %1 = vector.load %arg2[%c0_1, %c0_2] : memref<64x32xf32, #tpu.memory_space<vmem>>, vector<64x32xf32>
    %cst = arith.constant dense<0.000000e+00> : vector<16x64xf32>
    %2 = tpu.matmul %0, %1, %cst {dimension_numbers = #tpu.dot_dimension_numbers<[1], [1], [0], [0], [0, 0, 1, 0], [], []>} : vector<16x32xf32>, vector<64x32xf32>, vector<16x64xf32> -> vector<16x64xf32>
    %c0_3 = arith.constant 0 : index
    %c0_4 = arith.constant 0 : index
    %3 = vector.load %arg3[%c0_3, %c0_4] : memref<1x64xf32, #tpu.memory_space<vmem>>, vector<1x64xf32>
    %4 = vector.broadcast %3 : vector<1x64xf32> to vector<16x64xf32>
    %5 = arith.addf %2, %4 : vector<16x64xf32>
    %cst_5 = arith.constant 5.000000e-01 : f32
    %6 = vector.broadcast %cst_5 : f32 to vector<16x64xf32>
    %7 = arith.mulf %6, %5 : vector<16x64xf32>
    %cst_6 = arith.constant 0.707106769 : f32
    %8 = vector.broadcast %cst_6 : f32 to vector<16x64xf32>
    %9 = arith.mulf %5, %8 : vector<16x64xf32>
    %10 = math.erf %9 : vector<16x64xf32>
    %cst_7 = arith.constant 1.000000e+00 : f32
    %11 = vector.broadcast %cst_7 : f32 to vector<16x64xf32>
    %12 = arith.addf %11, %10 : vector<16x64xf32>
    %13 = arith.mulf %7, %12 : vector<16x64xf32>
    %c0_8 = arith.constant 0 : index
    %c0_9 = arith.constant 0 : index
    %14 = vector.load %arg4[%c0_8, %c0_9] : memref<32x64xf32, #tpu.memory_space<vmem>>, vector<32x64xf32>
    %cst_10 = arith.constant dense<0.000000e+00> : vector<16x32xf32>
    %15 = tpu.matmul %13, %14, %cst_10 {dimension_numbers = #tpu.dot_dimension_numbers<[1], [1], [0], [0], [0, 0, 1, 0], [], []>} : vector<16x64xf32>, vector<32x64xf32>, vector<16x32xf32> -> vector<16x32xf32>
    %c0_11 = arith.constant 0 : index
    %c0_12 = arith.constant 0 : index
    %16 = vector.load %arg5[%c0_11, %c0_12] : memref<1x32xf32, #tpu.memory_space<vmem>>, vector<1x32xf32>
    %17 = vector.broadcast %16 : vector<1x32xf32> to vector<16x32xf32>
    %18 = arith.addf %15, %17 : vector<16x32xf32>
    %c0_13 = arith.constant 0 : index
    %c0_14 = arith.constant 0 : index
    %19 = vector.load %arg6[%c0_13, %c0_14] : memref<16x32xf32, #tpu.memory_space<vmem>>, vector<16x32xf32>
    tpu.vector_store %arg6[%c0_13, %c0_14], %18 {strides = array<i32>} : memref<16x32xf32, #tpu.memory_space<vmem>>, vector<16x32xf32>,
    return
  }
  func.func @transform_0(%arg0: i32) -> (i32, i32) {
    %c0_i32 = arith.constant 0 : i32
    %c0_i32_0 = arith.constant 0 : i32
    return %arg0, %c0_i32 : i32, i32
  }
  func.func @transform_1(%arg0: i32) -> (i32, i32) {
    %c0_i32 = arith.constant 0 : i32
    %c0_i32_0 = arith.constant 0 : i32
    %c0_i32_1 = arith.constant 0 : i32
    return %c0_i32, %c0_i32_0 : i32, i32
  }
  func.func @transform_2(%arg0: i32) -> (i32, i32) {
    %c0_i32 = arith.constant 0 : i32
    %c0_i32_0 = arith.constant 0 : i32
    %c0_i32_1 = arith.constant 0 : i32
    return %c0_i32, %c0_i32_0 : i32, i32
  }
  func.func @transform_3(%arg0: i32) -> (i32, i32) {
    %c0_i32 = arith.constant 0 : i32
    %c0_i32_0 = arith.constant 0 : i32
    %c0_i32_1 = arith.constant 0 : i32
    return %c0_i32, %c0_i32_0 : i32, i32
  }
  func.func @transform_4(%arg0: i32) -> (i32, i32) {
    %c0_i32 = arith.constant 0 : i32
    %c0_i32_0 = arith.constant 0 : i32
    %c0_i32_1 = arith.constant 0 : i32
    return %c0_i32, %c0_i32_0 : i32, i32
  }
  func.func @transform_5(%arg0: i32) -> (i32, i32) {
    %c0_i32 = arith.constant 0 : i32
    %c0_i32_0 = arith.constant 0 : i32
    return %arg0, %c0_i32 : i32, i32
  }
}

</mosaic_0001>

<bundles_post_ra>
// kernel: mlp_forward.1
= control target key start
LH: loop header
LB: loop body
LE: loop exit
PB: predicated region body
PF: predicated region fallthrough
CT: control target
= control target key end

     0   :  { %vm38_vm0 = vcmask 261120   ;;  %s531_s0 = inlined_call_operand.vmem [shape: f32[16,32], index: 0, kind: input, shape index: {}]   ;;  %s532_s1 = inlined_call_operand.vmem [shape: f32[64,32], index: 1, kind: input, shape index: {}]   ;;  %s533_s2 = inlined_call_operand.vmem [shape: f32[1,64], index: 2, kind: input, shape index: {}]   ;;  %s534_s3 = inlined_call_operand.vmem [shape: f32[32,64], index: 3, kind: input, shape index: {}]   ;;  %s535_s4 = inlined_call_operand.vmem [shape: f32[1,32], index: 4, kind: input, shape index: {}]   ;;  %s536_s5 = inlined_call_operand.hbm [shape: f32[16,32], index: 5, kind: output, shape index: {}]  }
   0x1   :  { %v23_v0 = vld [vmem:[%s532_s1] sm:$0xff]  ;;  %v24_v1 = vld [vmem:[%s532_s1 + $0x8] sm:$0xff]  ;;  %v25_v2 = vld [vmem:[%s532_s1 + $0x10] sm:$0xff] }
   0x2   :  { %v341_v3 = vpack.c.bf16 %v24_v1, %v23_v0  ;;  %vm452_vm1 = vmpackc.low %vm38_vm0, %vm38_vm0  ;;  %v26_v5 = vld [vmem:[%s532_s1 + $0x18] sm:$0xff]  ;;  %v21_v7 = vld [vmem:[%s531_s0] sm:$0xff] }
   0x3   :  { %v347_v6 = vpack.c.bf16 %v26_v5, %v25_v2 }
   0x4   :  { %343 = vmatprep.subr.msk.bf16.mxu0 %vm452_vm1, %v341_v3 }
   0x5   :  { %10 = vsyncpa [#allocation3], 0  ;;  %346 = vmatpush3.bf16.xpose.msk.msra.mxu0 %vm452_vm1, %v341_v3  ;;  %327 = vmatprep.mubr.msk.f32.mxu0 %vm38_vm0, %v21_v7  ;;  %v27_v8 = vld [vmem:[%s532_s1 + $0x20] sm:$0xff]  ;;  %v28_v9 = vld [vmem:[%s532_s1 + $0x28] sm:$0xff]  ;;  %vm165_vm2 = vcmask 523264   ;;  %s408_s21 = smov [#allocation2]  }
   0x6   :  { %349 = vmatprep.subr.msk.bf16.mxu0 %vm452_vm1, %v347_v6  ;;  %v353_v10 = vpack.c.bf16 %v28_v9, %v27_v8  ;;  %v29_v11 = vld [vmem:[%s532_s1 + $0x30] sm:$0xff]  ;;  %v30_v12 = vld [vmem:[%s532_s1 + $0x38] sm:$0xff]  ;;  %v22_v14 = vld [vmem:[%s531_s0 + $0x8] sm:$0xff]  ;;  %s266_s22 = sshll.u32 %s408_s21, 4  ;;  %s267_s22 = int_to_ptr.vmem [resolvable:$true] %s266_s22 }
   0x7   :  { %v359_v13 = vpack.c.bf16 %v30_v12, %v29_v11  ;;  %v154_v15 = vld [vmem:[%s534_s3] sm:$0xff]  ;;  %v155_v16 = vld [vmem:[%s534_s3 + $0x8] sm:$0xff]  ;;  %vm366_vm3 = vmpackc.low %vm165_vm2, %vm165_vm2  ;;  %s384_s23 = scalar_lea.vmem %s267_s22, 256  ;;  %p389_p1 = scmp.lt.s32.totalorder %s267_s22, %s267_s22 }
   0x8   :  { %v365_v17 = vpack.c.bf16 %v155_v16, %v154_v15  ;;  %v156_v18 = vld [vmem:[%s534_s3 + $0x10] sm:$0xff]  ;;  %v157_v19 = vld [vmem:[%s534_s3 + $0x18] sm:$0xff]  ;;  %v277_v21 = vld [vmem:[%s533_s2] ss:$0 sm:$0xff]  ;;  %p385_p0 = scmp.ne.s32.totalorder %s267_s22, %s384_s23  ;;  %p390_p2 = scmp.lt.s32.totalorder %s384_s23, %s384_s23 }
   0x9   :  { %v371_v20 = vpack.c.bf16 %v157_v19, %v156_v18  ;;  %v288_v36 = vld [vmem:[%s535_s4] ss:$0 sm:$0xff] }
   0xa   :  { %367 = vmatprep.subr.msk.bf16.mxu1 %vm366_vm3, %v365_v17  ;;  %p391_p3 = por %p390_p2, %p389_p1 }
   0xb   :  { %370 = vmatpush3.bf16.xpose.msk.msra.mxu1 %vm366_vm3, %v365_v17 }
   0xc   :  { %373 = vmatprep.subr.msk.bf16.mxu1 %vm366_vm3, %v371_v20  ;;  %p392_p4 = pnand %p391_p3, %p385_p0 }
   0xd   :  { %352 = vmatpush3.bf16.xpose.msk.msra.mxu0 %vm452_vm1, %v347_v6 }
   0xe   :  { %355 = vmatprep.subr.msk.bf16.mxu0 %vm452_vm1, %v353_v10 }
  0x13   :  { %376 = vmatpush3.bf16.xpose.msk.msra.mxu1 %vm366_vm3, %v371_v20 }
  0x15   :  { %358 = vmatpush3.bf16.xpose.msk.msra.mxu0 %vm452_vm1, %v353_v10 }
  0x16   :  { %361 = vmatprep.subr.msk.bf16.mxu0 %vm452_vm1, %v359_v13 }
  0x1d   :  { %364 = vmatpush3.bf16.xpose.msk.msra.mxu0 %vm452_vm1, %v359_v13 }
  0x24   :  { %328 = vmatmul.mubr.msk.f32.vlgmr.msra.gmra.mrb[0].mxu0 %vm38_vm0, %v22_v14 }
  0xf7   :  { %v329_v22 = vpop.f32.mrb[0].mxu0 }
  0xf8   :  { %v141_v23 = vadd.f32 %v329_v22, %v277_v21  ;;  %v135_v24 = vpop.f32.mrb[1].mxu0 }
  0xf9   :  { %v136_v25 = vadd.f32 %v277_v21, %v135_v24 }
  0xfa   :  { %v147_v26 = vmul.f32 0.70710677, %v141_v23  ;;  %v145_v33 = vmul.f32 0.5, %v141_v23 }
  0xfb   :  { %v146_v27 = vmul.f32 0.70710677, %v136_v25  ;;  %v144_v31 = vmul.f32 0.5, %v136_v25 }
  0xfc   :  { %380 = verf.f32 %v147_v26 }
  0xfd   :  { %382 = verf.f32 %v146_v27 }
 0x106   :  { %v381_v28 = vpop.eup %380 }
 0x107   :  { %v383_v29 = vpop.eup %382  ;;  %v151_v30 = vadd.f32 1.0, %v381_v28 }
 0x108   :  { %v150_v32 = vadd.f32 1.0, %v383_v29 }
 0x109   :  { %v153_v35 = vmul.f32 %v151_v30, %v145_v33 }
 0x10a   :  { %v152_v34 = vmul.f32 %v150_v32, %v144_v31 }
 0x10c   :  { %338 = vmatprep.mubr.msk.f32.mxu1 %vm165_vm2, %v152_v34 }
 0x10d   :  { %339 = vmatmul.mubr.msk.f32.vlgmr.msra.gmra.mrb[0].mxu1 %vm165_vm2, %v153_v35 }
 0x1e0   :  { %v340_v37 = vpop.f32.mrb[0].mxu1 }
 0x1e1   :  { %v256_v38 = vadd.f32 %v340_v37, %v288_v36  ;;  %v250_v39 = vpop.f32.mrb[1].mxu1 }
 0x1e2   :  { %v251_v40 = vadd.f32 %v288_v36, %v250_v39 }
 0x1e3   :  { %260 = vst.msk [vmem:[#allocation2 + $0x8] sm:$0xff] %vm38_vm0, %v256_v38 }
 0x1e4   :  { %259 = vst.msk [vmem:[#allocation2] sm:$0xff] %vm38_vm0, %v251_v40 }
 0x1e5   :  { %395 = shalt.err (!%p392_p4)
}
 0x1e6   :  { %s396_s25 = scalar_lea.hbm %s536_s5, 256 }
 0x1e7   :  { %p397_p5 = scmp.ne.s32.totalorder %s536_s5, %s396_s25  ;;  %p400_p6 = scmp.lt.u32.totalorder %s396_s25, %s536_s5 }
 0x1e9   :  { %p402_p7 = pnand %p400_p6, %p397_p5 }
 0x1eb   :  { %405 = shalt.err (!%p402_p7)
}
 0x1ec   :  { %s409_s30 = smov 128   ;;  %s410_s6 = smov 8  }
 0x1ed   :  { %272 = dma.vmem_to_hbm [thread:$0]  %s267_s22, 256, %s536_s5, [#allocation3], %s409_s30, %s409_s30, %s410_s6  }
 0x1ee   :  { %406 = dma.done.wait [#allocation3], 256  }
 0x1ef   :  { %407 = vsyncadd [#allocation3], 4294967040 }
 0x1f0   :  { %276 = vsyncpa [#allocation3], 1 }

</bundles_post_ra>
